<compile_context>
chip_gen: v7x
topology: tpu7x:2x2x1
jax: 0.10.0
libtpu: 0.0.40
codegen_flags: <defaults>
</compile_context>

<pallas_src>
import functools
import math

import jax
import jax.numpy as jnp
from jax import lax
from jax.experimental import pallas as pl
from jax.experimental.pallas import tpu as pltpu


_VMEM_LIMIT_BYTES = 32 * 1024 * 1024   # explicit scoped-VMEM budget (fits v5e/v6e/v7x)
_TARGET_STEP_BYTES = 2 << 20           # ~2 MiB of input DMA per grid step
_MAX_LANE_TILE = 64 * 1024


# ----------------------------------------------------------------------------
# planning helpers
# ----------------------------------------------------------------------------
def _round_up(x, m):
    return -(-x // m) * m


def _plan_lanes(hw, bytes_per_lane, batch):
    """Pick (hw_pad, lane_tile) for a (batch, hw) pixel grid.

    Targets ~_TARGET_STEP_BYTES moved per grid step (amortizes the ~0.35us
    per-step overhead) while keeping the double-buffered working set well
    under the 32 MiB scoped-VMEM budget; keeps total grid >= 2 so the
    'parallel' axes shard across both v7x TensorCores.
    """
    hw128 = _round_up(max(hw, 1), 128)
    cap = _TARGET_STEP_BYTES // max(bytes_per_lane, 1)
    cap = max(128, min(_MAX_LANE_TILE, cap // 128 * 128))
    if cap >= 1024:
        cap = cap // 1024 * 1024           # chunk-friendly tiles
    if hw128 <= cap:
        tile = hw128
    else:
        n_tiles = -(-hw128 // cap)
        tile = _round_up(-(-hw128 // n_tiles), 1024 if cap >= 1024 else 128)
    n_tiles = -(-hw128 // tile)
    hw_pad = n_tiles * tile
    if batch * n_tiles == 1 and tile % 256 == 0:   # keep grid >= 2 (megacore)
        tile //= 2
        n_tiles = 2
    return hw_pad, tile, n_tiles


def _pick_chunk(tile, n_out_rows, cap):
    """Largest lane sub-chunk (multiple of 128, divides tile, <= target) so the
    (n_out_rows, chunk) f32 working set stays comfortably in the vreg file."""
    target = max(128, min(cap, (8192 // max(n_out_rows, 8)) // 128 * 128))
    chunk = min(tile, target)
    while tile % chunk:
        chunk -= 128
    return chunk


# ----------------------------------------------------------------------------
# shared in-kernel helpers
# ----------------------------------------------------------------------------
def _hoisted_params(wt_ref, b_ref, k, cin, chunk, use_vpu):
    """Load weights/bias once per grid step and hoist lane broadcasts above the
    chunk loop (broadcast_in_dim is not CSE'd)."""
    wf = wt_ref[...].astype(jnp.float32)                                 # (K, Cin)
    bias_b = jnp.broadcast_to(b_ref[...].astype(jnp.float32), (k, chunk))
    w_cols = None
    if use_vpu:
        w_cols = tuple(jnp.broadcast_to(wf[:, c:c + 1], (k, chunk))
                       for c in range(cin))
    return wf, bias_b, w_cols


def _logits(xc, wf, bias_b, w_cols):
    """xc: (Cin, chunk) f32 -> (K, chunk) f32 logits."""
    if w_cols is None:
        # Contraction on the otherwise-idle MXU (Cin >= 8).
        return jnp.dot(wf, xc, preferred_element_type=jnp.float32) + bias_b
    # Tiny Cin: unrolled VPU broadcast-FMA (weight broadcasts hoisted).
    acc = bias_b
    for c, wc in enumerate(w_cols):
        acc = acc + wc * xc[c:c + 1, :]
    return acc


# ----------------------------------------------------------------------------
# Kernel 1: per-pixel linear layer (1x1 conv): (K,Cin) @ (Cin,tile) + bias
# ----------------------------------------------------------------------------
def _make_conv1x1_kernel(cin, k, tile, chunk):
    n_chunks = tile // chunk
    use_vpu = cin < 8

    def kernel(x_ref, wt_ref, b_ref, o_ref):
        wf, bias_b, w_cols = _hoisted_params(wt_ref, b_ref, k, cin, chunk, use_vpu)

        def step(off):
            xc = x_ref[:, pl.ds(off, chunk)].astype(jnp.float32)
            o_ref[:, pl.ds(off, chunk)] = _logits(xc, wf, bias_b, w_cols).astype(o_ref.dtype)

        if n_chunks == 1:
            step(0)
        else:
            def body(ci, carry):
                step(pl.multiple_of(ci * chunk, 128))
                return carry
            lax.fori_loop(0, n_chunks, body, 0, unroll=n_chunks <= 4)

    return kernel


def _run_conv1x1(x3, wt, bt, tile):
    """x3: (N, C, HW_pad) -> (N, K, HW_pad) float32 logits."""
    n, c, hw_pad = x3.shape
    k = wt.shape[0]
    n_tiles = hw_pad // tile
    chunk = _pick_chunk(tile, k, cap=(512 if c < 8 else 1024))
    return pl.pallas_call(
        _make_conv1x1_kernel(c, k, tile, chunk),
        out_shape=jax.ShapeDtypeStruct((n, k, hw_pad), jnp.float32),
        grid_spec=pltpu.PrefetchScalarGridSpec(
            num_scalar_prefetch=0,
            grid=(n, n_tiles),
            in_specs=[
                pl.BlockSpec((None, c, tile), lambda b, i: (b, 0, i)),
                pl.BlockSpec((k, c), lambda b, i: (0, 0)),    # weights resident
                pl.BlockSpec((k, 1), lambda b, i: (0, 0)),    # bias resident
            ],
            out_specs=pl.BlockSpec((None, k, tile), lambda b, i: (b, 0, i)),
        ),
        compiler_params=pltpu.CompilerParams(
            dimension_semantics=("parallel", "parallel"),
            vmem_limit_bytes=_VMEM_LIMIT_BYTES),
    )(x3, wt, bt)


# ----------------------------------------------------------------------------
# Kernel 2 (fused): conv1x1 -> argmax pseudo-label + softmax entropy
# ----------------------------------------------------------------------------
def _make_pseudo_kernel(cin, k, tile, chunk, hw, hw_pad):
    n_chunks = tile // chunk
    use_vpu = cin < 8
    need_mask = hw_pad != hw

    def kernel(x_ref, wt_ref, b_ref, lbl_ref, ent_ref):
        wf, bias_b, w_cols = _hoisted_params(wt_ref, b_ref, k, cin, chunk, use_vpu)
        kiota = lax.broadcasted_iota(jnp.int32, (k, chunk), 0)
        if need_mask:
            lane_iota = lax.broadcasted_iota(jnp.int32, (1, chunk), 1)
            tile_start = pl.program_id(1) * tile

        def step(off):
            xc = x_ref[:, pl.ds(off, chunk)].astype(jnp.float32)
            logits = _logits(xc, wf, bias_b, w_cols)                     # (K, chunk)
            # argmax over classes (sublane axis); first occurrence among ties.
            m = jnp.max(logits, axis=0, keepdims=True)                   # (1, chunk)
            lbl = jnp.min(jnp.where(logits == m, kiota, jnp.int32(k)),
                          axis=0, keepdims=True)
            # softmax entropy: H = log(S) - sum(e*(x-m))/S; one log + one
            # approx reciprocal per pixel (both on the otherwise-idle EUP).
            shifted = logits - m
            e = jnp.exp(shifted)
            s = jnp.sum(e, axis=0, keepdims=True)
            ent = (jnp.log(s)
                   - jnp.sum(e * shifted, axis=0, keepdims=True)
                   * pl.reciprocal(s, approx=True))
            if need_mask:
                pad = (tile_start + off + lane_iota) >= hw
                lbl = jnp.where(pad, jnp.int32(255), lbl)
                ent = jnp.where(pad, jnp.float32(jnp.inf), ent)
            lbl_ref[:, pl.ds(off, chunk)] = lbl.astype(jnp.int32)
            ent_ref[:, pl.ds(off, chunk)] = ent

        if n_chunks == 1:
            step(0)
        else:
            def body(ci, carry):
                step(pl.multiple_of(ci * chunk, 128))
                return carry
            lax.fori_loop(0, n_chunks, body, 0, unroll=n_chunks <= 4)

    return kernel


def _run_pseudo(x3, wt, bt, tile, hw):
    n, c, hw_pad = x3.shape
    k = wt.shape[0]
    n_tiles = hw_pad // tile
    chunk = _pick_chunk(tile, k, cap=(512 if c < 8 else 1024))
    return pl.pallas_call(
        _make_pseudo_kernel(c, k, tile, chunk, hw, hw_pad),
        out_shape=(jax.ShapeDtypeStruct((n, 1, hw_pad), jnp.int32),
                   jax.ShapeDtypeStruct((n, 1, hw_pad), jnp.float32)),
        grid_spec=pltpu.PrefetchScalarGridSpec(
            num_scalar_prefetch=0,
            grid=(n, n_tiles),
            in_specs=[
                pl.BlockSpec((None, c, tile), lambda b, i: (b, 0, i)),
                pl.BlockSpec((k, c), lambda b, i: (0, 0)),
                pl.BlockSpec((k, 1), lambda b, i: (0, 0)),
            ],
            out_specs=(
                pl.BlockSpec((None, 1, tile), lambda b, i: (b, 0, i)),
                pl.BlockSpec((None, 1, tile), lambda b, i: (b, 0, i)),
            ),
        ),
        compiler_params=pltpu.CompilerParams(
            dimension_semantics=("parallel", "parallel"),
            vmem_limit_bytes=_VMEM_LIMIT_BYTES),
    )(x3, wt, bt)


# ----------------------------------------------------------------------------
# Kernel 3: filter unreliable pixels ((entropy >= thresh) & (label != 255)) -> 255
#           also emits per-tile kept-pixel partial counts (no extra label pass)
# ----------------------------------------------------------------------------
def _make_filter_kernel(tile, chunk):
    n_chunks = tile // chunk

    def kernel(th_ref, lbl_ref, ent_ref, out_ref, cnt_ref):
        th = th_ref[0]

        def step(off, kept):
            lbl = lbl_ref[:, pl.ds(off, chunk)]
            ent = ent_ref[:, pl.ds(off, chunk)]
            drop = (ent >= th) & (lbl != 255)
            new = jnp.where(drop, jnp.int32(255), lbl)
            out_ref[:, pl.ds(off, chunk)] = new
            return kept + jnp.sum((new != 255).astype(jnp.int32))

        if n_chunks == 1:
            kept = step(0, jnp.int32(0))
        else:
            def body(ci, kp):
                return step(pl.multiple_of(ci * chunk, 128), kp)
            kept = lax.fori_loop(0, n_chunks, body, jnp.int32(0),
                                 unroll=n_chunks <= 4)
        # per-tile partial count at [0, 0] of an (8,128) block, zeros elsewhere;
        # XLA sums the tiny partials array (no extra full label pass).
        row = lax.broadcasted_iota(jnp.int32, (8, 128), 0)
        col = lax.broadcasted_iota(jnp.int32, (8, 128), 1)
        cnt_ref[...] = jnp.where((row == 0) & (col == 0), kept, jnp.int32(0))

    return kernel


def _run_filter(thresh, labels, entropy, tile, *, alias):
    n, _, hw_pad = labels.shape
    n_tiles = hw_pad // tile
    chunk = _pick_chunk(tile, 2, cap=2048)
    thresh_arr = jnp.reshape(thresh, (1,)).astype(jnp.float32)
    kwargs = {"input_output_aliases": {1: 0}} if alias else {}   # labels in -> labels out
    return pl.pallas_call(
        _make_filter_kernel(tile, chunk),
        out_shape=(jax.ShapeDtypeStruct((n, 1, hw_pad), jnp.int32),
                   jax.ShapeDtypeStruct((n * 8, n_tiles * 128), jnp.int32)),
        grid_spec=pltpu.PrefetchScalarGridSpec(
            num_scalar_prefetch=1,                               # thresh -> SMEM
            grid=(n, n_tiles),
            in_specs=[
                pl.BlockSpec((None, 1, tile), lambda b, i, th: (b, 0, i)),
                pl.BlockSpec((None, 1, tile), lambda b, i, th: (b, 0, i)),
            ],
            out_specs=(
                pl.BlockSpec((None, 1, tile), lambda b, i, th: (b, 0, i)),
                pl.BlockSpec((8, 128), lambda b, i, th: (b, i)),
            ),
        ),
        compiler_params=pltpu.CompilerParams(
            dimension_semantics=("parallel", "parallel"),
            vmem_limit_bytes=_VMEM_LIMIT_BYTES),
        **kwargs,
    )(thresh_arr, labels, entropy)


# ----------------------------------------------------------------------------
# threshold: O(P) histogram + tiny cumsum instead of an O(P log P) sort
# ----------------------------------------------------------------------------
def _histogram_percentile(values, q_percent, upper_bound, *, nbins=4096):
    """Approximate np.percentile(values, q, interpolation='linear') for values
    in [0, upper_bound] (softmax entropy <= log(num_classes))."""
    n = values.shape[0]
    width = upper_bound / nbins
    idx = jnp.clip((values * (1.0 / width)).astype(jnp.int32), 0, nbins - 1)
    hist = jnp.zeros((nbins,), jnp.int32).at[idx].add(1)
    cdf = jnp.cumsum(hist)
    rank = q_percent * (1.0 / 100.0) * (n - 1)
    b = jnp.clip(jnp.sum((cdf.astype(jnp.float32) <= rank).astype(jnp.int32)),
                 0, nbins - 1)
    below = jnp.where(b > 0, cdf[jnp.maximum(b, 1) - 1], 0).astype(jnp.float32)
    in_bin = jnp.maximum(hist[b], 1).astype(jnp.float32)
    frac = jnp.clip((rank - below) / in_bin, 0.0, 1.0)
    return (b.astype(jnp.float32) + frac) * width


# ----------------------------------------------------------------------------
# jit-ed pipelines (only free reshapes around the Pallas kernels)
# ----------------------------------------------------------------------------
@jax.jit
def _teacher_forward(w, b, x_nchw):
    n, c, h, wd = x_nchw.shape
    k = w.shape[1]
    hw = h * wd
    hw_pad, tile, _ = _plan_lanes(hw, 4 * (c + k), n)
    x3 = x_nchw.reshape(n, c, hw)                       # free reshape, no transpose
    if hw_pad != hw:
        x3 = jnp.pad(x3, ((0, 0), (0, 0), (0, hw_pad - hw)))
    wt = jnp.transpose(w)                               # (K, Cin)  -- tiny
    bt = jnp.reshape(b, (-1, 1))                        # (K, 1)
    logits = _run_conv1x1(x3, wt, bt, tile)             # (N, K, HW_pad)
    return logits[:, :, :hw].reshape(n, k, h, wd)


@functools.partial(jax.jit, static_argnames=("apply_filter",))
def _pseudo_label_pipeline(w, b, ul_w_img, keep_percent, apply_filter):
    n, c, h, wd = ul_w_img.shape
    k = w.shape[1]
    hw = h * wd
    hw_pad, tile, _ = _plan_lanes(hw, 4 * (c + 2), n)
    x3 = ul_w_img.reshape(n, c, hw)
    if hw_pad != hw:
        x3 = jnp.pad(x3, ((0, 0), (0, 0), (0, hw_pad - hw)))
    wt = jnp.transpose(w)
    bt = jnp.reshape(b, (-1, 1))
    # bilinear resize back to input spatial size is the identity here
    # (1x1 head preserves H, W; same-size + align_corners=True == identity).
    labels, entropy = _run_pseudo(x3, wt, bt, tile, hw)  # (N,1,HW_pad) each
    if apply_filter:
        # teacher argmax is always < num_classes (< 255), so the reference's
        # entropy[label != 255] selection keeps every (real) pixel.
        ent_valid = entropy[:, :, :hw].reshape(-1)
        thresh = _histogram_percentile(ent_valid, keep_percent,
                                       math.log(max(k, 2)))
        try:
            labels, counts = _run_filter(thresh, labels, entropy, tile, alias=True)
        except Exception:   # alias-index convention mismatch -> safe fallback
            labels, counts = _run_filter(thresh, labels, entropy, tile, alias=False)
        kept = jnp.maximum(jnp.sum(counts), 1)
        reweight = jnp.float32(n * hw) / kept.astype(jnp.float32)
    else:
        reweight = jnp.float32(1.0)
    labels_out = labels[:, :, :hw].reshape(n, 1, h, wd)
    return labels_out, reweight


# ----------------------------------------------------------------------------
# MeanTeacher wrapper
# ----------------------------------------------------------------------------
class MeanTeacherPallas:
    def __init__(self, teacher_params, unsup_weight=1.0,
                 drop_unrel_pixels_percent=20, semisl_start_epoch=0,
                 filter_pixels_epochs=100):
        # teacher params are frozen; student_model = deepcopy(teacher) at init.
        self.teacher_params = teacher_params
        self.student_params = jax.tree_util.tree_map(jnp.copy, teacher_params)
        self.unsup_weight = unsup_weight
        self.drop_unrel_pixels_percent = drop_unrel_pixels_percent
        self.semisl_start_epoch = semisl_start_epoch
        self.filter_pixels_epochs = filter_pixels_epochs

    def forward(self, inputs, mode="tensor"):
        # mode != 'loss' path of MeanTeacher.forward: teacher inference.
        if mode != "loss":
            w, b = self.teacher_params
            return _teacher_forward(w, b, inputs)
        # TODO(synk): full 'loss' mode needs cut_mixer / calculate_loss of the
        # wrapped segmentation model, which are not defined in this module.
        raise NotImplementedError

    def generate_pseudo_labels(self, ul_w_img, percent_unreliable):
        w, b = self.teacher_params
        apply_filter = bool(percent_unreliable > 0)
        keep_percent = jnp.float32(100.0 - percent_unreliable) if apply_filter \
            else jnp.float32(100.0)
        return _pseudo_label_pipeline(w, b, ul_w_img, keep_percent, apply_filter)


# ----------------------------------------------------------------------------
# main
# ----------------------------------------------------------------------------
if __name__ == "__main__":
    key = jax.random.PRNGKey(0)
    k_x, k_u, k_w, k_b = jax.random.split(key, 4)

    N, C, H, W = 2, 4, 16, 16
    NUM_CLASSES = 8

    inputs = jax.random.normal(k_x, (N, C, H, W), dtype=jnp.float32)
    unlabeled_weak_images = jax.random.normal(k_u, (N, C, H, W), dtype=jnp.float32)

    # deterministic teacher params: 1x1 conv (C -> NUM_CLASSES) weight + bias
    w = jax.random.normal(k_w, (C, NUM_CLASSES), dtype=jnp.float32) * 0.5
    b = jax.random.normal(k_b, (1, NUM_CLASSES), dtype=jnp.float32) * 0.1

    mt = MeanTeacherPallas((w, b), unsup_weight=1.0,
                           drop_unrel_pixels_percent=20,
                           semisl_start_epoch=0, filter_pixels_epochs=100)

    # 1) default forward (mode='tensor'): teacher inference via Pallas conv kernel
    teacher_logits = jax.block_until_ready(mt.forward(inputs, mode="tensor"))
    assert teacher_logits.shape == (N, NUM_CLASSES, H, W)

    # 2) pseudo-label generation (semi-supervised hot path), filtering active
    pl_labels, reweight = mt.generate_pseudo_labels(
        unlabeled_weak_images, percent_unreliable=20.0)
    pl_labels = jax.block_until_ready(pl_labels)
    reweight = jax.block_until_ready(reweight)
    assert pl_labels.shape == (N, 1, H, W)
    assert pl_labels.dtype == jnp.int32

    # also exercise the no-filter branch
    pl_nofilter, rw_nofilter = mt.generate_pseudo_labels(
        unlabeled_weak_images, percent_unreliable=-1.0)
    jax.block_until_ready(pl_nofilter)
    assert float(rw_nofilter) == 1.0

    # ----- sanity checks vs. pure-JAX reference -----
    ref_logits = jnp.einsum("nchw,ck->nkhw", inputs, w) + b.reshape(1, NUM_CLASSES, 1, 1)
    assert jnp.allclose(teacher_logits, ref_logits, atol=1e-4, rtol=1e-4)

    ref_logits_u = (jnp.einsum("nchw,ck->nkhw", unlabeled_weak_images, w)
                    + b.reshape(1, NUM_CLASSES, 1, 1))
    ref_prob = jax.nn.softmax(ref_logits_u, axis=1)
    ref_lbl = jnp.argmax(ref_prob, axis=1, keepdims=True).astype(jnp.int32)
    ref_ent = -jnp.sum(ref_prob * jnp.log(ref_prob + 1e-10), axis=1, keepdims=True)
    ref_thresh = jnp.percentile(ref_ent.reshape(-1), 100.0 - 20.0)
    ref_mask = (ref_ent >= ref_thresh) & (ref_lbl != 255)
    ref_lbl_filtered = jnp.where(ref_mask, jnp.int32(255), ref_lbl)
    # allow a handful of boundary-pixel differences (histogram-interpolated
    # threshold + approx reciprocal vs. exact sort percentile)
    assert int(jnp.sum(pl_labels != ref_lbl_filtered)) <= 8
    ref_reweight = (N * H * W) / float(jnp.sum(ref_lbl_filtered != 255))
    assert abs(float(reweight) - ref_reweight) / ref_reweight < 0.05
    assert jnp.array_equal(pl_nofilter, ref_lbl.reshape(N, 1, H, W))

    print("KERNEL_OK")
</pallas_src>

<mosaic_0001>
module attributes {stable_mosaic.version = 11 : i64} {
  func.func @kernel(%arg0: i32, %arg1: i32, %arg2: memref<1x4x256xf32, #tpu.memory_space<vmem>>, %arg3: memref<8x4xf32, #tpu.memory_space<vmem>>, %arg4: memref<8x1xf32, #tpu.memory_space<vmem>>, %arg5: memref<1x8x256xf32, #tpu.memory_space<vmem>>) attributes {dimension_semantics = [#tpu.dimension_semantics<parallel>, #tpu.dimension_semantics<parallel>], iteration_bounds = array<i64: 2, 1>, scalar_prefetch = 0 : i64, scratch_operands = 0 : i64, tpu.core_type = #tpu.core_type<tc>, window_params = [{transform_indices = @transform_0, window_bounds = array<i64: 1, 4, 256>}, {pipeline_mode = #tpu.pipeline_mode<synchronous>, transform_indices = @transform_1, window_bounds = array<i64: 8, 4>}, {pipeline_mode = #tpu.pipeline_mode<synchronous>, transform_indices = @transform_2, window_bounds = array<i64: 8, 1>}, {transform_indices = @transform_3, window_bounds = array<i64: 1, 8, 256>}]} {
    %c0 = arith.constant 0 : index
    %c0_0 = arith.constant 0 : index
    %0 = vector.load %arg3[%c0, %c0_0] : memref<8x4xf32, #tpu.memory_space<vmem>>, vector<8x4xf32>
    %c0_1 = arith.constant 0 : index
    %c0_2 = arith.constant 0 : index
    %1 = vector.load %arg4[%c0_1, %c0_2] : memref<8x1xf32, #tpu.memory_space<vmem>>, vector<8x1xf32>
    %2 = vector.shape_cast %1 : vector<8x1xf32> to vector<8x1xf32>
    %3 = vector.broadcast %2 : vector<8x1xf32> to vector<8x256xf32>
    %4 = vector.extract_strided_slice %0 {offsets = [0, 0], sizes = [8, 1], strides = [1, 1]} : vector<8x4xf32> to vector<8x1xf32>
    %5 = vector.shape_cast %4 : vector<8x1xf32> to vector<8x1xf32>
    %6 = vector.broadcast %5 : vector<8x1xf32> to vector<8x256xf32>
    %7 = vector.extract_strided_slice %0 {offsets = [0, 1], sizes = [8, 1], strides = [1, 1]} : vector<8x4xf32> to vector<8x1xf32>
    %8 = vector.shape_cast %7 : vector<8x1xf32> to vector<8x1xf32>
    %9 = vector.broadcast %8 : vector<8x1xf32> to vector<8x256xf32>
    %10 = vector.extract_strided_slice %0 {offsets = [0, 2], sizes = [8, 1], strides = [1, 1]} : vector<8x4xf32> to vector<8x1xf32>
    %11 = vector.shape_cast %10 : vector<8x1xf32> to vector<8x1xf32>
    %12 = vector.broadcast %11 : vector<8x1xf32> to vector<8x256xf32>
    %13 = vector.extract_strided_slice %0 {offsets = [0, 3], sizes = [8, 1], strides = [1, 1]} : vector<8x4xf32> to vector<8x1xf32>
    %14 = vector.shape_cast %13 : vector<8x1xf32> to vector<8x1xf32>
    %15 = vector.broadcast %14 : vector<8x1xf32> to vector<8x256xf32>
    %c0_3 = arith.constant 0 : index
    %c0_4 = arith.constant 0 : index
    %c0_5 = arith.constant 0 : index
    %16 = vector.load %arg2[%c0_3, %c0_4, %c0_5] : memref<1x4x256xf32, #tpu.memory_space<vmem>>, vector<1x4x256xf32>
    %17 = vector.shape_cast %16 : vector<1x4x256xf32> to vector<4x256xf32>
    %18 = vector.extract_strided_slice %17 {offsets = [0, 0], sizes = [1, 256], strides = [1, 1]} : vector<4x256xf32> to vector<1x256xf32>
    %19 = vector.broadcast %18 : vector<1x256xf32> to vector<8x256xf32>
    %20 = arith.mulf %6, %19 : vector<8x256xf32>
    %21 = arith.addf %3, %20 : vector<8x256xf32>
    %22 = vector.extract_strided_slice %17 {offsets = [1, 0], sizes = [1, 256], strides = [1, 1]} : vector<4x256xf32> to vector<1x256xf32>
    %23 = vector.broadcast %22 : vector<1x256xf32> to vector<8x256xf32>
    %24 = arith.mulf %9, %23 : vector<8x256xf32>
    %25 = arith.addf %21, %24 : vector<8x256xf32>
    %26 = vector.extract_strided_slice %17 {offsets = [2, 0], sizes = [1, 256], strides = [1, 1]} : vector<4x256xf32> to vector<1x256xf32>
    %27 = vector.broadcast %26 : vector<1x256xf32> to vector<8x256xf32>
    %28 = arith.mulf %12, %27 : vector<8x256xf32>
    %29 = arith.addf %25, %28 : vector<8x256xf32>
    %30 = vector.extract_strided_slice %17 {offsets = [3, 0], sizes = [1, 256], strides = [1, 1]} : vector<4x256xf32> to vector<1x256xf32>
    %31 = vector.broadcast %30 : vector<1x256xf32> to vector<8x256xf32>
    %32 = arith.mulf %15, %31 : vector<8x256xf32>
    %33 = arith.addf %29, %32 : vector<8x256xf32>
    %c0_6 = arith.constant 0 : index
    %c0_7 = arith.constant 0 : index
    %c0_8 = arith.constant 0 : index
    %34 = vector.load %arg5[%c0_6, %c0_7, %c0_8] : memref<1x8x256xf32, #tpu.memory_space<vmem>>, vector<1x8x256xf32>
    %35 = vector.shape_cast %34 : vector<1x8x256xf32> to vector<8x256xf32>
    %36 = vector.shape_cast %33 : vector<8x256xf32> to vector<1x8x256xf32>
    tpu.vector_store %arg5[%c0_6, %c0_7, %c0_8], %36 {strides = array<i32>} : memref<1x8x256xf32, #tpu.memory_space<vmem>>, vector<1x8x256xf32>,
    return
  }
  func.func @transform_0(%arg0: i32, %arg1: i32) -> (i32, i32, i32) {
    %c0_i32 = arith.constant 0 : i32
    %c0_i32_0 = arith.constant 0 : i32
    return %arg0, %c0_i32, %arg1 : i32, i32, i32
  }
  func.func @transform_1(%arg0: i32, %arg1: i32) -> (i32, i32) {
    %c0_i32 = arith.constant 0 : i32
    %c0_i32_0 = arith.constant 0 : i32
    %c0_i32_1 = arith.constant 0 : i32
    return %c0_i32, %c0_i32_0 : i32, i32
  }
  func.func @transform_2(%arg0: i32, %arg1: i32) -> (i32, i32) {
    %c0_i32 = arith.constant 0 : i32
    %c0_i32_0 = arith.constant 0 : i32
    %c0_i32_1 = arith.constant 0 : i32
    return %c0_i32, %c0_i32_0 : i32, i32
  }
  func.func @transform_3(%arg0: i32, %arg1: i32) -> (i32, i32, i32) {
    %c0_i32 = arith.constant 0 : i32
    %c0_i32_0 = arith.constant 0 : i32
    return %arg0, %c0_i32, %arg1 : i32, i32, i32
  }
}

</mosaic_0001>

<bundles_post_ra>
// kernel: _teacher_forward.1
= control target key start
LH: loop header
LB: loop body
LE: loop exit
PB: predicated region body
PF: predicated region fallthrough
CT: control target
= control target key end

     0   :  { %s506_s12 = smov 0   ;;  %s508_s13 = smov 0   ;;  %s549_s0 = inlined_call_operand.vmem [shape: f32[2,4,256], index: 0, kind: input, shape index: {}]   ;;  %s550_s1 = inlined_call_operand.vmem [shape: f32[8,4], index: 1, kind: input, shape index: {}]   ;;  %s551_s2 = inlined_call_operand.vmem [shape: f32[8,1], index: 2, kind: input, shape index: {}]   ;;  %s552_s3 = inlined_call_operand.vmem [shape: f32[2,8,256], index: 3, kind: output, shape index: {}]  }
   0x1   :  { %s510_s14 = smov 0  }
   0x2 LB: > { %s25_s15 = sadd.s32 1, %s476_s13  ;;  %p417_p0 = scmp.ge.s32.totalorder %s480_s14, 1  ;;  %s480_s14 = sphi %s510_s14, %s13_s14   ;;  %s476_s13 = sphi %s508_s13, %s554_s13   ;;  %s472_s12 = sphi %s506_s12, %s553_s12  }
   0x3   : > { %p27_p1 = scmp.ge.s32.totalorder %s25_s15, 2  ;;  %p158_p2 = scmp.lt.s32.totalorder %s480_s14, 3 }
   0x5   : > { %s556_s15 = smov (%p27_p1, %s25_s15), 0  ;;  %p159_p3 = pnand %p417_p0, %p158_p2 }
   0x6   : > { %v210_v0 = vld [vmem:[%s550_s1] sm:$0xff] (!%p159_p3)  ;;  %v482_v1 = vmov (!%p159_p3), 0   ;;  %v483_v2 = vmov (!%p159_p3), 1   ;;  %v484_v4 = vmov (!%p159_p3), 2   ;;  %v485_v5 = vmov (!%p159_p3), 3   ;;  %p191_p4 = scmp.lt.s32.totalorder (!%p159_p3), %s472_s12, 1 }
   0x7   : > { %162 = sbr.rel (%p159_p3) target bundleno = 150 (0x96), region = 32  ;;  %454 = vset.pattern.permute.xlu0 (!%p159_p3), %v482_v1  ;;  %455 = vset.pattern.permute.xlu1 (!%p159_p3), %v483_v2  ;;  %v211_v3 = vld [vmem:[%s551_s2] sm:$0xff] (!%p159_p3)  ;;  %v236_v6 = vlaneseq (!%p159_p3) }
   0x8   : > { %219 = vperm.xlu0 (!%p159_p3), %454, %v210_v0   ;;  %223 = vperm.xlu1 (!%p159_p3), %455, %v210_v0  }
   0x9   : > { %v237_v7 = vshrl.u32 (!%p159_p3), %v236_v6, 7 }
   0xb   : > { %v238_v8 = vsub.s32 (!%p159_p3), 0, %v237_v7  ;;  %v242_v9 = vsub.s32 (!%p159_p3), 4, %v237_v7  ;;  %v260_v11 = vsub.s32 (!%p159_p3), 1, %v237_v7  ;;  %v264_v12 = vsub.s32 (!%p159_p3), 5, %v237_v7 }
   0xc   : > { %214 = vperm.xlu0 (!%p159_p3), %454, %v211_v3   ;;  %456 = vset.pattern.permute.xlu1 (!%p159_p3), %v484_v4  ;;  %v282_v13 = vsub.s32 (!%p159_p3), 2, %v237_v7  ;;  %v286_v14 = vsub.s32 (!%p159_p3), 6, %v237_v7  ;;  %v304_v21 = vsub.s32 (!%p159_p3), 3, %v237_v7  ;;  %v308_v22 = vsub.s32 (!%p159_p3), 7, %v237_v7 }
   0xd   : > { %227 = vperm.xlu1 (!%p159_p3), %456, %v210_v0  }
   0xe   : > { %s558_s12 = smov (!%p191_p4, %s472_s12), 1 }
   0xf   : > { %s424_s20 = sshll.u32 %s558_s12, 3  ;;  %s425_s24 = sshll.u32 %s558_s12, 4 }
  0x10   : > { %457 = vset.pattern.permute.xlu0 %v485_v5  ;;  %s198_s23 = scalar_lea.vmem %s549_s0, %s424_s20  ;;  %s208_s27 = scalar_lea.vmem %s552_s3, %s425_s24 }
  0x11   : > { %231 = vperm.xlu0 %457, %v210_v0   ;;  %v234_v10 = vld [vmem:[%s198_s23] sm:$0xff] }
  0x12   : > { %v239_v15 = vrot.slane %v234_v10, %v238_v8  ;;  %v243_v16 = vrot.slane %v234_v10, %v242_v9  ;;  %v261_v17 = vrot.slane %v234_v10, %v260_v11  ;;  %v265_v18 = vrot.slane %v234_v10, %v264_v12 }
  0x13   : > { %v283_v19 = vrot.slane %v234_v10, %v282_v13  ;;  %v287_v20 = vrot.slane %v234_v10, %v286_v14  ;;  %v305_v31 = vrot.slane %v234_v10, %v304_v21  ;;  %v309_v32 = vrot.slane %v234_v10, %v308_v22 }
  0x14   : > { %v249_v23 = vrot.slane %v239_v15, %v238_v8  ;;  %v253_v24 = vrot.slane %v243_v16, %v238_v8  ;;  %v271_v27 = vrot.slane %v261_v17, %v260_v11  ;;  %v275_v28 = vrot.slane %v265_v18, %v260_v11 }
  0x15   : > { %v293_v29 = vrot.slane %v283_v19, %v282_v13  ;;  %v297_v30 = vrot.slane %v287_v20, %v282_v13  ;;  %v315_v43 = vrot.slane %v305_v31, %v304_v21  ;;  %v319_v44 = vrot.slane %v309_v32, %v304_v21 }
  0x87   : > { %v220_v25 = vpop.permute.xlu0 %219  ;;  %v224_v26 = vpop.permute.xlu1 %223 }
  0x88   : > { %v254_v33 = vmul.f32 %v249_v23, %v220_v25  ;;  %v255_v34 = vmul.f32 %v253_v24, %v220_v25  ;;  %v276_v36 = vmul.f32 %v271_v27, %v224_v26  ;;  %v277_v37 = vmul.f32 %v275_v28, %v224_v26 }
  0x8b   : > { %v215_v35 = vpop.permute.xlu0 %214 }
  0x8c   : > { %v256_v38 = vadd.f32 %v254_v33, %v215_v35  ;;  %v257_v39 = vadd.f32 %v255_v34, %v215_v35  ;;  %v228_v40 = vpop.permute.xlu1 %227 }
  0x8d   : > { %v298_v41 = vmul.f32 %v293_v29, %v228_v40  ;;  %v299_v42 = vmul.f32 %v297_v30, %v228_v40 }
  0x8e   : > { %v278_v45 = vadd.f32 %v276_v36, %v256_v38  ;;  %v279_v46 = vadd.f32 %v277_v37, %v257_v39 }
  0x90   : > { %v300_v47 = vadd.f32 %v298_v41, %v278_v45  ;;  %v301_v48 = vadd.f32 %v299_v42, %v279_v46  ;;  %v232_v49 = vpop.permute.xlu0 %231 }
  0x91   : > { %v320_v50 = vmul.f32 %v315_v43, %v232_v49  ;;  %v321_v51 = vmul.f32 %v319_v44, %v232_v49 }
  0x93   : > { %v322_v52 = vadd.f32 %v320_v50, %v300_v47  ;;  %v323_v53 = vadd.f32 %v321_v51, %v301_v48 }
  0x95   : > { %324 = vst [vmem:[%s208_s27] sm:$0xff] %v322_v52  ;;  %325 = vst [vmem:[%s208_s27 + $0x8] sm:$0xff] %v323_v53 }
  0x96 PF: > { %s13_s14 = sadd.s32 1, %s480_s14   ;;  %s553_s12 = smov %s476_s13 }
  0x97   : > { %p10_p5 = scmp.ge.s32.totalorder %s13_s14, 4   ;;  %s554_s13 = smov %s556_s15 }
  0x99   :  { %12 = sbr.rel (!%p10_p5) target bundleno = 2 (0x2), region = 62 }

</bundles_post_ra>
